<compile_context>
chip_gen: v5e
topology: v5e:2x2
jax: 0.10.0
libtpu: 0.0.40
codegen_flags: <defaults>
</compile_context>

<pallas_src>
import functools

import numpy as np

import jax
import jax.numpy as jnp
from jax.experimental import pallas as pl
from jax.experimental.pallas import tpu as pltpu


_LANE = 128
_SUBLANE = 8


def _round_up(x, m):
    return ((x + m - 1) // m) * m


def _pad2d(a, rows, cols):
    r, c = a.shape
    if r == rows and c == cols:
        return a
    return jnp.pad(a, ((0, rows - r), (0, cols - c)))


@functools.lru_cache(maxsize=None)
def _vmem_capacity_bytes():
    cap = 128 * 1024 * 1024
    try:
        info = pltpu.get_tpu_info()
        cap = int(getattr(info, "vmem_capacity_bytes", cap))
    except Exception:
        pass
    return cap


@functools.lru_cache(maxsize=None)
def _vmem_limit_cap():
    cap = _vmem_capacity_bytes()
    if cap >= (100 << 20):        # v5e / v6e: 128 MiB physical VMEM
        return 100 << 20
    return int(cap * 7 // 8)      # v7x: ~56 MiB of the 64 MiB per-TC VMEM


@functools.lru_cache(maxsize=None)
def _fused_vmem_budget():
    cap = _vmem_capacity_bytes()
    if cap >= (100 << 20):
        return 96 << 20           # keep mid-size MLPs fused on v5e/v6e
    return int(cap * 3 // 4)      # ~48 MiB on v7x


@functools.lru_cache(maxsize=None)
def _has_wide_mxu():
    # v6e / v7x have a 2x256^2 MXU; v5e (and older) are 128-wide.
    try:
        kind = jax.devices()[0].device_kind.lower()
    except Exception:
        return False
    return ("v6" in kind) or ("v7" in kind)


def _pick_batch_tile(m, cap=256):
    """Row-tile (multiple of 8) minimising padding waste; prefers >=2 grid
    steps when possible so v7x's second TensorCore gets work."""
    m8 = _round_up(max(int(m), 1), _SUBLANE)
    if m8 < 16:
        return m8, m8
    cands = set()
    half = _round_up(-(-m8 // 2), _SUBLANE)
    if half <= cap:
        cands.add(half)
    for t in (128, 256, 512):
        if t <= min(m8, cap):
            cands.add(t)
    if not cands:
        cands.add(min(m8, cap))
    best = None
    for t in sorted(cands):
        mp = _round_up(m8, t)
        # minimise padded rows; then prefer >=2 steps; then the largest tile
        key = (mp, 0 if mp // t > 1 else 1, -t)
        if best is None or key < best[0]:
            best = (key, t, mp)
    return best[1], best[2]


def _largest_divisor_tile(padded, cands):
    for t in cands:
        if padded % t == 0:
            return t
    return _LANE


def _apply_activation(y, activation):
    # y is float32; keep the epilogue in f32 (v5e VPU/EUP have no bf16 path).
    if activation == "linear":
        return y
    if activation == "relu":
        return jnp.maximum(y, 0.0)
    if activation == "tanh":
        return jnp.tanh(y)
    if activation == "sigmoid":
        return jax.nn.sigmoid(y)
    raise ValueError("Activation must be one of relu, tanh, and sigmoid.")


# ----------------------------------------------------------------------------
# Fused whole-MLP kernel: one batch tile per grid step, all layers unrolled.
# Inter-layer activations ping-pong between two VMEM scratch buffers.
# ----------------------------------------------------------------------------
def _mlp_fused_kernel(*refs, activation, n_layers, dims_pad):
    # refs = (x, w0, b0, ..., w_{L-1}, b_{L-1}, out, scratch0, scratch1)
    x_ref = refs[0]
    o_ref = refs[1 + 2 * n_layers]
    scratch = (refs[2 + 2 * n_layers], refs[3 + 2 * n_layers])
    for li in range(n_layers):
        w_ref = refs[1 + 2 * li]
        b_ref = refs[2 + 2 * li]
        if li == 0:
            lhs = x_ref[...]
        else:
            lhs = scratch[(li - 1) % 2][:, : dims_pad[li]]
        y = jnp.dot(lhs.astype(w_ref.dtype), w_ref[...],
                    preferred_element_type=jnp.float32)
        y = y + b_ref[...]                 # (1, dout) broadcast, f32 epilogue
        if li < n_layers - 1:
            y = _apply_activation(y, activation)
            scratch[li % 2][:, : dims_pad[li + 1]] = y
        else:
            o_ref[...] = y.astype(o_ref.dtype)


def _mlp_fused(x_p, weights, biases, activation, tm, out_dtype):
    """x_p: (B_pad, d_in_pad); weights[i]: (din_pad, dout_pad); biases[i]: (1, dout_pad)."""
    B_pad, d_in = x_p.shape
    n_layers = len(weights)
    d_out = weights[-1].shape[1]
    dims_pad = [d_in] + [w.shape[1] for w in weights]
    inter = dims_pad[1:-1]
    max_scratch = max(inter) if inter else _LANE
    max_d = max(dims_pad)
    out_dtype = np.dtype(out_dtype)

    operands = [x_p]
    for w, b in zip(weights, biases):
        operands.append(w)
        operands.append(b)

    def build_in_specs(single_buffer_params):
        specs = [pl.BlockSpec((tm, d_in), lambda i: (i, 0))]
        for w, b in zip(weights, biases):
            if single_buffer_params:
                # Grid-invariant params: single-buffer them (halves footprint).
                specs.append(pl.BlockSpec(w.shape, lambda i: (0, 0),
                                          pipeline_mode=pl.Buffered(1)))
                specs.append(pl.BlockSpec(b.shape, lambda i: (0, 0),
                                          pipeline_mode=pl.Buffered(1)))
            else:
                specs.append(pl.BlockSpec(w.shape, lambda i: (0, 0)))
                specs.append(pl.BlockSpec(b.shape, lambda i: (0, 0)))
        return specs

    param_bytes = sum(int(a.size) * a.dtype.itemsize for a in operands[1:])
    est = (param_bytes                                                   # single-buffered params
           + 2 * tm * max_scratch * 4                                    # ping-pong scratch
           + 2 * tm * (d_in * x_p.dtype.itemsize + d_out * out_dtype.itemsize)  # pipelined io
           + 2 * tm * max_d * 4)                                         # live temporaries
    # The limit is only a ceiling; leave room for the double-buffered-params
    # fallback path too.
    vmem_limit = int(min(max(2 * est + param_bytes, 4 << 20), _vmem_limit_cap()))

    kernel = functools.partial(_mlp_fused_kernel, activation=activation,
                               n_layers=n_layers, dims_pad=tuple(dims_pad))

    def call(single_buffer_params):
        return pl.pallas_call(
            kernel,
            out_shape=jax.ShapeDtypeStruct((B_pad, d_out), out_dtype),
            grid=(B_pad // tm,),
            in_specs=build_in_specs(single_buffer_params),
            out_specs=pl.BlockSpec((tm, d_out), lambda i: (i, 0)),
            scratch_shapes=[pltpu.VMEM((tm, max_scratch), jnp.float32),
                            pltpu.VMEM((tm, max_scratch), jnp.float32)],
            compiler_params=pltpu.CompilerParams(
                dimension_semantics=("parallel",),
                vmem_limit_bytes=vmem_limit,
            ),
        )(*operands)

    try:
        return call(True)
    except Exception:
        # pipeline_mode=pl.Buffered(1) not supported on this jax build:
        # fall back to default (double-buffered) parameter specs.
        return call(False)


# ----------------------------------------------------------------------------
# Tiled per-layer fallback: out = act(x @ w + b) with M/N/K tiling.
# ----------------------------------------------------------------------------
def _linear_act_tiled_kernel(x_ref, w_ref, b_ref, o_ref, acc_ref, *, activation):
    k = pl.program_id(2)

    @pl.when(k == 0)
    def _():
        acc_ref[...] = jnp.zeros_like(acc_ref)

    acc_ref[...] += jnp.dot(x_ref[...].astype(w_ref.dtype), w_ref[...],
                            preferred_element_type=jnp.float32)

    @pl.when(k == pl.num_programs(2) - 1)
    def _():
        y = acc_ref[...] + b_ref[...]     # f32 epilogue
        y = _apply_activation(y, activation)
        o_ref[...] = y.astype(o_ref.dtype)


def linear_act_tiled(x, w, b, activation, *, out_dtype=jnp.float32,
                     tm=None, tn=None, tk=None):
    """out = act(x @ w + b), tiled/pipelined.  Pads M to the row tile and K/N
    to lane multiples; returns the unpadded (M, N) result in `out_dtype`."""
    M, K = x.shape
    Kw, N = w.shape
    assert K == Kw, "inner dims must match"
    out_dtype = np.dtype(out_dtype)
    wide_mxu = _has_wide_mxu()
    limit_cap = _vmem_limit_cap()
    big_vmem = _vmem_capacity_bytes() >= (100 << 20)   # v5e/v6e yes, v7x no

    n_align = 256 if (wide_mxu and N > _LANE) else _LANE   # fill 256-wide MXU
    K_pad = _round_up(K, _LANE)
    N_pad = _round_up(N, n_align)

    auto_tn = tn is None
    auto_tk = tk is None
    if tm is None:
        tm, M_pad = _pick_batch_tile(M, cap=512 if big_vmem else 256)
    else:
        M_pad = _round_up(M, tm)
    if auto_tn:
        tn = _largest_divisor_tile(N_pad, (512, 256, 128) if wide_mxu else (256, 128))
    if auto_tk:
        tk = _largest_divisor_tile(
            K_pad, (1024, 512, 256, 128) if (wide_mxu and big_vmem) else (512, 256, 128))

    x_p = _pad2d(x, M_pad, K_pad)
    w_p = _pad2d(w, K_pad, N_pad)
    b_p = _pad2d(jnp.asarray(b, jnp.float32).reshape(1, -1), 1, N_pad)

    def _est(tm_, tn_, tk_):
        return (2 * tm_ * tk_ * x_p.dtype.itemsize      # double-buffered lhs tiles
                + 2 * tk_ * tn_ * w_p.dtype.itemsize    # double-buffered rhs tiles
                + 2 * tn_ * 4                           # bias tiles
                + tm_ * tn_ * 4                         # f32 accumulator
                + 2 * tm_ * tn_ * out_dtype.itemsize)   # pipelined output tiles

    # Shrink auto-chosen tiles until they fit the per-generation VMEM cap
    # (important on v7x's 64 MiB per-TC VMEM).
    while auto_tk and _est(tm, tn, tk) > limit_cap and tk > _LANE:
        tk //= 2
    while auto_tn and _est(tm, tn, tk) > limit_cap and tn > _LANE:
        tn //= 2
    vmem_limit = int(min(max(2 * _est(tm, tn, tk), 4 << 20), limit_cap))

    kernel = functools.partial(_linear_act_tiled_kernel, activation=activation)
    out_p = pl.pallas_call(
        kernel,
        out_shape=jax.ShapeDtypeStruct((M_pad, N_pad), out_dtype),
        grid=(M_pad // tm, N_pad // tn, K_pad // tk),
        in_specs=[
            pl.BlockSpec((tm, tk), lambda i, j, k: (i, k)),
            pl.BlockSpec((tk, tn), lambda i, j, k: (k, j)),
            pl.BlockSpec((1, tn), lambda i, j, k: (0, j)),
        ],
        out_specs=pl.BlockSpec((tm, tn), lambda i, j, k: (i, j)),
        scratch_shapes=[pltpu.VMEM((tm, tn), jnp.float32)],
        compiler_params=pltpu.CompilerParams(
            dimension_semantics=("parallel", "parallel", "arbitrary"),
            vmem_limit_bytes=vmem_limit,
        ),
    )(x_p, w_p, b_p)
    return out_p[:M, :N]


# ----------------------------------------------------------------------------
# Module wrapper mirroring the PyTorch MLP.
# ----------------------------------------------------------------------------
class MLPPallas:
    """Mirrors the PyTorch MLP: Linear(dim[i+1] -> dim[i+2]) for
    i in range(len(dim) - 2); activation after every layer except the last."""

    def __init__(self, dim, activation, key, compute_dtype=jnp.float32,
                 out_dtype=jnp.float32, force_tiled=False):
        if activation not in ("linear", "relu", "tanh", "sigmoid"):
            raise ValueError("Activation must be one of relu, tanh, and sigmoid.")
        if len(dim) < 3:
            raise ValueError("dim must have at least 3 entries.")
        self.dim = list(dim)
        self.activation = activation
        self.compute_dtype = np.dtype(compute_dtype)
        self.out_dtype = np.dtype(out_dtype)
        self.force_tiled = force_tiled
        self.n_layers = len(dim) - 2
        # Logical layer sizes: dim[1] -> dim[2] -> ... -> dim[-1]
        self.dims = [dim[i + 1] for i in range(self.n_layers + 1)]
        # Lane-dense padded sizes (multiples of 128)
        self.pdims = [_round_up(d, _LANE) for d in self.dims]

        self.weights_f32 = []  # unpadded (din, dout), reference / export
        self.biases_f32 = []   # unpadded (dout,)
        self.w_pad = []        # padded, compute_dtype (pre-transposed: x @ W)
        self.b_pad = []        # padded (1, pdout), f32

        keys = jax.random.split(key, 2 * self.n_layers)
        for i in range(self.n_layers):
            fan_in, fan_out = self.dims[i], self.dims[i + 1]
            bound = 1.0 / (fan_in ** 0.5)  # matches nn.Linear default init range
            w = jax.random.uniform(keys[2 * i], (fan_in, fan_out), jnp.float32,
                                   -bound, bound)
            bvec = jax.random.uniform(keys[2 * i + 1], (fan_out,), jnp.float32,
                                      -bound, bound)
            self.weights_f32.append(w)
            self.biases_f32.append(bvec)
            self.w_pad.append(
                _pad2d(w, self.pdims[i], self.pdims[i + 1]).astype(self.compute_dtype))
            self.b_pad.append(
                _pad2d(bvec.reshape(1, -1), 1, self.pdims[i + 1]))

    def _fused_vmem_bytes(self, tm):
        # Weights/biases are single-buffered (grid-invariant) in the fused path.
        param = sum(int(w.size) * w.dtype.itemsize for w in self.w_pad)
        param += sum(int(b.size) * 4 for b in self.b_pad)
        inter = self.pdims[1:-1]
        scratch = 2 * tm * (max(inter) if inter else _LANE) * 4
        io = 2 * tm * (self.pdims[0] * self.compute_dtype.itemsize
                       + self.pdims[-1] * self.out_dtype.itemsize)
        live = 2 * tm * max(self.pdims) * 4
        return param + scratch + io + live

    def __call__(self, x):
        B = x.shape[0]
        tm, B_pad = _pick_batch_tile(B, cap=256)
        x_p = _pad2d(x.astype(self.compute_dtype), B_pad, self.pdims[0])

        if (not self.force_tiled
                and self._fused_vmem_bytes(tm) <= _fused_vmem_budget()):
            # Whole MLP in a single kernel; intermediates stay in VMEM.
            out_p = _mlp_fused(x_p, self.w_pad, self.b_pad, self.activation,
                               tm, self.out_dtype)
        else:
            # Layers too large for a fully VMEM-resident fusion: one tiled,
            # pipelined linear+activation kernel per layer.  Inter-layer
            # activations are carried in compute_dtype (bf16 halves HBM traffic).
            h = x_p
            for li in range(self.n_layers):
                last = li == self.n_layers - 1
                act = "linear" if last else self.activation
                inter_dtype = self.out_dtype if last else self.compute_dtype
                h = linear_act_tiled(h, self.w_pad[li], self.b_pad[li], act,
                                     out_dtype=inter_dtype)
            out_p = h
        return out_p[:B, : self.dims[-1]]


if __name__ == "__main__":
    key = jax.random.PRNGKey(0)
    k_params, k_x, k_t = jax.random.split(key, 3)

    # dim[0] is unused in forward (as in the PyTorch module); input feat = dim[1]
    dim = [10, 32, 64, 48, 16]
    batch = 8
    activation = "tanh"

    # --- fused f32 path ------------------------------------------------------
    mlp = MLPPallas(dim, activation, k_params)
    x = jax.random.normal(k_x, (batch, dim[1]), jnp.float32)
    out = mlp(x)
    jax.block_until_ready(out)

    ref = x
    for i in range(len(dim) - 3):
        ref = jnp.tanh(ref @ mlp.weights_f32[i] + mlp.biases_f32[i])
    ref = ref @ mlp.weights_f32[-1] + mlp.biases_f32[-1]
    assert out.shape == (batch, dim[-1])
    assert jnp.allclose(out, ref, atol=1e-5, rtol=1e-5)

    # --- fused bf16-MXU path (f32 accumulate + f32 epilogue) -------------------
    mlp_bf16 = MLPPallas(dim, activation, k_params, compute_dtype=jnp.bfloat16)
    out_bf16 = mlp_bf16(x)
    jax.block_until_ready(out_bf16)
    assert out_bf16.shape == (batch, dim[-1])
    assert jnp.allclose(out_bf16, ref, atol=1e-1, rtol=1e-1)

    # --- forced tiled fallback path (bf16 inter-layer activations) ------------
    mlp_tiled = MLPPallas(dim, activation, k_params, compute_dtype=jnp.bfloat16,
                          force_tiled=True)
    out_tiled = mlp_tiled(x)
    jax.block_until_ready(out_tiled)
    assert out_tiled.shape == (batch, dim[-1])
    assert jnp.allclose(out_tiled, ref, atol=1e-1, rtol=1e-1)

    # --- standalone tiled kernel (padding + multi-K accumulation) -------------
    M2, K2, N2 = 200, 300, 250
    kx, kw, kb = jax.random.split(k_t, 3)
    x2 = jax.random.normal(kx, (M2, K2), jnp.float32)
    w2 = jax.random.normal(kw, (K2, N2), jnp.float32) * 0.05
    b2 = jax.random.normal(kb, (N2,), jnp.float32)
    y2 = linear_act_tiled(x2, w2, b2, "sigmoid")
    jax.block_until_ready(y2)
    ref2 = jax.nn.sigmoid(x2 @ w2 + b2)
    assert y2.shape == (M2, N2)
    assert jnp.allclose(y2, ref2, atol=1e-4, rtol=1e-4)

    print("KERNEL_OK")
</pallas_src>

<mosaic_0001>
module attributes {stable_mosaic.version = 11 : i64} {
  func.func @_mlp_fused_kernel(%arg0: i32, %arg1: memref<8x128xf32, #tpu.memory_space<vmem>>, %arg2: memref<128x128xf32, #tpu.memory_space<vmem>>, %arg3: memref<1x128xf32, #tpu.memory_space<vmem>>, %arg4: memref<128x128xf32, #tpu.memory_space<vmem>>, %arg5: memref<1x128xf32, #tpu.memory_space<vmem>>, %arg6: memref<128x128xf32, #tpu.memory_space<vmem>>, %arg7: memref<1x128xf32, #tpu.memory_space<vmem>>, %arg8: memref<8x128xf32, #tpu.memory_space<vmem>>, %arg9: memref<8x128xf32, #tpu.memory_space<vmem>>, %arg10: memref<8x128xf32, #tpu.memory_space<vmem>>) attributes {dimension_semantics = [#tpu.dimension_semantics<parallel>], iteration_bounds = array<i64: 1>, scalar_prefetch = 0 : i64, scratch_operands = 2 : i64, tpu.core_type = #tpu.core_type<tc>, window_params = [{transform_indices = @transform_0, window_bounds = array<i64: 8, 128>}, {pipeline_mode = #tpu.pipeline_mode<synchronous>, transform_indices = @transform_1, window_bounds = array<i64: 128, 128>}, {pipeline_mode = #tpu.pipeline_mode<synchronous>, transform_indices = @transform_2, window_bounds = array<i64: 1, 128>}, {pipeline_mode = #tpu.pipeline_mode<synchronous>, transform_indices = @transform_3, window_bounds = array<i64: 128, 128>}, {pipeline_mode = #tpu.pipeline_mode<synchronous>, transform_indices = @transform_4, window_bounds = array<i64: 1, 128>}, {pipeline_mode = #tpu.pipeline_mode<synchronous>, transform_indices = @transform_5, window_bounds = array<i64: 128, 128>}, {pipeline_mode = #tpu.pipeline_mode<synchronous>, transform_indices = @transform_6, window_bounds = array<i64: 1, 128>}, {transform_indices = @transform_7, window_bounds = array<i64: 8, 128>}]} {
    %c0 = arith.constant 0 : index
    %c0_0 = arith.constant 0 : index
    %0 = vector.load %arg1[%c0, %c0_0] : memref<8x128xf32, #tpu.memory_space<vmem>>, vector<8x128xf32>
    %c0_1 = arith.constant 0 : index
    %c0_2 = arith.constant 0 : index
    %1 = vector.load %arg2[%c0_1, %c0_2] : memref<128x128xf32, #tpu.memory_space<vmem>>, vector<128x128xf32>
    %cst = arith.constant dense<0.000000e+00> : vector<8x128xf32>
    %2 = tpu.matmul %0, %1, %cst {dimension_numbers = #tpu.dot_dimension_numbers<[1], [0], [0], [1], [0, 0, 1, 1], [], []>} : vector<8x128xf32>, vector<128x128xf32>, vector<8x128xf32> -> vector<8x128xf32>
    %c0_3 = arith.constant 0 : index
    %c0_4 = arith.constant 0 : index
    %3 = vector.load %arg3[%c0_3, %c0_4] : memref<1x128xf32, #tpu.memory_space<vmem>>, vector<1x128xf32>
    %4 = vector.broadcast %3 : vector<1x128xf32> to vector<8x128xf32>
    %5 = arith.addf %2, %4 : vector<8x128xf32>
    %6 = math.tanh %5 : vector<8x128xf32>
    %c0_5 = arith.constant 0 : index
    %c0_6 = arith.constant 0 : index
    %7 = vector.load %arg9[%c0_5, %c0_6] : memref<8x128xf32, #tpu.memory_space<vmem>>, vector<8x128xf32>
    tpu.vector_store %arg9[%c0_5, %c0_6], %6 {strides = array<i32>} : memref<8x128xf32, #tpu.memory_space<vmem>>, vector<8x128xf32>,
    %c0_7 = arith.constant 0 : index
    %c0_8 = arith.constant 0 : index
    %8 = vector.load %arg9[%c0_7, %c0_8] : memref<8x128xf32, #tpu.memory_space<vmem>>, vector<8x128xf32>
    %c0_9 = arith.constant 0 : index
    %c0_10 = arith.constant 0 : index
    %9 = vector.load %arg4[%c0_9, %c0_10] : memref<128x128xf32, #tpu.memory_space<vmem>>, vector<128x128xf32>
    %cst_11 = arith.constant dense<0.000000e+00> : vector<8x128xf32>
    %10 = tpu.matmul %8, %9, %cst_11 {dimension_numbers = #tpu.dot_dimension_numbers<[1], [0], [0], [1], [0, 0, 1, 1], [], []>} : vector<8x128xf32>, vector<128x128xf32>, vector<8x128xf32> -> vector<8x128xf32>
    %c0_12 = arith.constant 0 : index
    %c0_13 = arith.constant 0 : index
    %11 = vector.load %arg5[%c0_12, %c0_13] : memref<1x128xf32, #tpu.memory_space<vmem>>, vector<1x128xf32>
    %12 = vector.broadcast %11 : vector<1x128xf32> to vector<8x128xf32>
    %13 = arith.addf %10, %12 : vector<8x128xf32>
    %14 = math.tanh %13 : vector<8x128xf32>
    %c0_14 = arith.constant 0 : index
    %c0_15 = arith.constant 0 : index
    %15 = vector.load %arg10[%c0_14, %c0_15] : memref<8x128xf32, #tpu.memory_space<vmem>>, vector<8x128xf32>
    tpu.vector_store %arg10[%c0_14, %c0_15], %14 {strides = array<i32>} : memref<8x128xf32, #tpu.memory_space<vmem>>, vector<8x128xf32>,
    %c0_16 = arith.constant 0 : index
    %c0_17 = arith.constant 0 : index
    %16 = vector.load %arg10[%c0_16, %c0_17] : memref<8x128xf32, #tpu.memory_space<vmem>>, vector<8x128xf32>
    %c0_18 = arith.constant 0 : index
    %c0_19 = arith.constant 0 : index
    %17 = vector.load %arg6[%c0_18, %c0_19] : memref<128x128xf32, #tpu.memory_space<vmem>>, vector<128x128xf32>
    %cst_20 = arith.constant dense<0.000000e+00> : vector<8x128xf32>
    %18 = tpu.matmul %16, %17, %cst_20 {dimension_numbers = #tpu.dot_dimension_numbers<[1], [0], [0], [1], [0, 0, 1, 1], [], []>} : vector<8x128xf32>, vector<128x128xf32>, vector<8x128xf32> -> vector<8x128xf32>
    %c0_21 = arith.constant 0 : index
    %c0_22 = arith.constant 0 : index
    %19 = vector.load %arg7[%c0_21, %c0_22] : memref<1x128xf32, #tpu.memory_space<vmem>>, vector<1x128xf32>
    %20 = vector.broadcast %19 : vector<1x128xf32> to vector<8x128xf32>
    %21 = arith.addf %18, %20 : vector<8x128xf32>
    %c0_23 = arith.constant 0 : index
    %c0_24 = arith.constant 0 : index
    %22 = vector.load %arg8[%c0_23, %c0_24] : memref<8x128xf32, #tpu.memory_space<vmem>>, vector<8x128xf32>
    tpu.vector_store %arg8[%c0_23, %c0_24], %21 {strides = array<i32>} : memref<8x128xf32, #tpu.memory_space<vmem>>, vector<8x128xf32>,
    return
  }
  func.func @transform_0(%arg0: i32) -> (i32, i32) {
    %c0_i32 = arith.constant 0 : i32
    %c0_i32_0 = arith.constant 0 : i32
    return %arg0, %c0_i32 : i32, i32
  }
  func.func @transform_1(%arg0: i32) -> (i32, i32) {
    %c0_i32 = arith.constant 0 : i32
    %c0_i32_0 = arith.constant 0 : i32
    %c0_i32_1 = arith.constant 0 : i32
    return %c0_i32, %c0_i32_0 : i32, i32
  }
  func.func @transform_2(%arg0: i32) -> (i32, i32) {
    %c0_i32 = arith.constant 0 : i32
    %c0_i32_0 = arith.constant 0 : i32
    %c0_i32_1 = arith.constant 0 : i32
    return %c0_i32, %c0_i32_0 : i32, i32
  }
  func.func @transform_3(%arg0: i32) -> (i32, i32) {
    %c0_i32 = arith.constant 0 : i32
    %c0_i32_0 = arith.constant 0 : i32
    %c0_i32_1 = arith.constant 0 : i32
    return %c0_i32, %c0_i32_0 : i32, i32
  }
  func.func @transform_4(%arg0: i32) -> (i32, i32) {
    %c0_i32 = arith.constant 0 : i32
    %c0_i32_0 = arith.constant 0 : i32
    %c0_i32_1 = arith.constant 0 : i32
    return %c0_i32, %c0_i32_0 : i32, i32
  }
  func.func @transform_5(%arg0: i32) -> (i32, i32) {
    %c0_i32 = arith.constant 0 : i32
    %c0_i32_0 = arith.constant 0 : i32
    %c0_i32_1 = arith.constant 0 : i32
    return %c0_i32, %c0_i32_0 : i32, i32
  }
  func.func @transform_6(%arg0: i32) -> (i32, i32) {
    %c0_i32 = arith.constant 0 : i32
    %c0_i32_0 = arith.constant 0 : i32
    %c0_i32_1 = arith.constant 0 : i32
    return %c0_i32, %c0_i32_0 : i32, i32
  }
  func.func @transform_7(%arg0: i32) -> (i32, i32) {
    %c0_i32 = arith.constant 0 : i32
    %c0_i32_0 = arith.constant 0 : i32
    return %arg0, %c0_i32 : i32, i32
  }
}

module attributes {stable_mosaic.version = 11 : i64} {
  func.func @_mlp_fused_kernel(%arg0: i32, %arg1: memref<8x128xf32, #tpu.memory_space<vmem>>, %arg2: memref<128x128xf32, #tpu.memory_space<vmem>>, %arg3: memref<1x128xf32, #tpu.memory_space<vmem>>, %arg4: memref<128x128xf32, #tpu.memory_space<vmem>>, %arg5: memref<1x128xf32, #tpu.memory_space<vmem>>, %arg6: memref<128x128xf32, #tpu.memory_space<vmem>>, %arg7: memref<1x128xf32, #tpu.memory_space<vmem>>, %arg8: memref<8x128xf32, #tpu.memory_space<vmem>>, %arg9: memref<8x128xf32, #tpu.memory_space<vmem>>, %arg10: memref<8x128xf32, #tpu.memory_space<vmem>>) attributes {dimension_semantics = [#tpu.dimension_semantics<parallel>], iteration_bounds = array<i64: 1>, scalar_prefetch = 0 : i64, scratch_operands = 2 : i64, tpu.core_type = #tpu.core_type<tc>, window_params = [{transform_indices = @transform_0, window_bounds = array<i64: 8, 128>}, {pipeline_mode = #tpu.pipeline_mode<synchronous>, transform_indices = @transform_1, window_bounds = array<i64: 128, 128>}, {pipeline_mode = #tpu.pipeline_mode<synchronous>, transform_indices = @transform_2, window_bounds = array<i64: 1, 128>}, {pipeline_mode = #tpu.pipeline_mode<synchronous>, transform_indices = @transform_3, window_bounds = array<i64: 128, 128>}, {pipeline_mode = #tpu.pipeline_mode<synchronous>, transform_indices = @transform_4, window_bounds = array<i64: 1, 128>}, {pipeline_mode = #tpu.pipeline_mode<synchronous>, transform_indices = @transform_5, window_bounds = array<i64: 128, 128>}, {pipeline_mode = #tpu.pipeline_mode<synchronous>, transform_indices = @transform_6, window_bounds = array<i64: 1, 128>}, {transform_indices = @transform_7, window_bounds = array<i64: 8, 128>}]} {
    %c0 = arith.constant 0 : index
    %c0_0 = arith.constant 0 : index
    %0 = vector.load %arg1[%c0, %c0_0] : memref<8x128xf32, #tpu.memory_space<vmem>>, vector<8x128xf32>
    %c0_1 = arith.constant 0 : index
    %c0_2 = arith.constant 0 : index
    %1 = vector.load %arg2[%c0_1, %c0_2] : memref<128x128xf32, #tpu.memory_space<vmem>>, vector<128x128xf32>
    %cst = arith.constant dense<0.000000e+00> : vector<8x128xf32>
    %2 = tpu.matmul %0, %1, %cst {dimension_numbers = #tpu.dot_dimension_numbers<[1], [0], [0], [1], [0, 0, 1, 1], [], []>} : vector<8x128xf32>, vector<128x128xf32>, vector<8x128xf32> -> vector<8x128xf32>
    %c0_3 = arith.constant 0 : index
    %c0_4 = arith.constant 0 : index
    %3 = vector.load %arg3[%c0_3, %c0_4] : memref<1x128xf32, #tpu.memory_space<vmem>>, vector<1x128xf32>
    %4 = vector.broadcast %3 : vector<1x128xf32> to vector<8x128xf32>
    %5 = arith.addf %2, %4 : vector<8x128xf32>
    %6 = math.tanh %5 : vector<8x128xf32>
    %c0_5 = arith.constant 0 : index
    %c0_6 = arith.constant 0 : index
    %7 = vector.load %arg9[%c0_5, %c0_6] : memref<8x128xf32, #tpu.memory_space<vmem>>, vector<8x128xf32>
    tpu.vector_store %arg9[%c0_5, %c0_6], %6 {strides = array<i32>} : memref<8x128xf32, #tpu.memory_space<vmem>>, vector<8x128xf32>,
    %c0_7 = arith.constant 0 : index
    %c0_8 = arith.constant 0 : index
    %8 = vector.load %arg9[%c0_7, %c0_8] : memref<8x128xf32, #tpu.memory_space<vmem>>, vector<8x128xf32>
    %c0_9 = arith.constant 0 : index
    %c0_10 = arith.constant 0 : index
    %9 = vector.load %arg4[%c0_9, %c0_10] : memref<128x128xf32, #tpu.memory_space<vmem>>, vector<128x128xf32>
    %cst_11 = arith.constant dense<0.000000e+00> : vector<8x128xf32>
    %10 = tpu.matmul %8, %9, %cst_11 {dimension_numbers = #tpu.dot_dimension_numbers<[1], [0], [0], [1], [0, 0, 1, 1], [], []>} : vector<8x128xf32>, vector<128x128xf32>, vector<8x128xf32> -> vector<8x128xf32>
    %c0_12 = arith.constant 0 : index
    %c0_13 = arith.constant 0 : index
    %11 = vector.load %arg5[%c0_12, %c0_13] : memref<1x128xf32, #tpu.memory_space<vmem>>, vector<1x128xf32>
    %12 = vector.broadcast %11 : vector<1x128xf32> to vector<8x128xf32>
    %13 = arith.addf %10, %12 : vector<8x128xf32>
    %14 = math.tanh %13 : vector<8x128xf32>
    %c0_14 = arith.constant 0 : index
    %c0_15 = arith.constant 0 : index
    %15 = vector.load %arg10[%c0_14, %c0_15] : memref<8x128xf32, #tpu.memory_space<vmem>>, vector<8x128xf32>
    tpu.vector_store %arg10[%c0_14, %c0_15], %14 {strides = array<i32>} : memref<8x128xf32, #tpu.memory_space<vmem>>, vector<8x128xf32>,
    %c0_16 = arith.constant 0 : index
    %c0_17 = arith.constant 0 : index
    %16 = vector.load %arg10[%c0_16, %c0_17] : memref<8x128xf32, #tpu.memory_space<vmem>>, vector<8x128xf32>
    %c0_18 = arith.constant 0 : index
    %c0_19 = arith.constant 0 : index
    %17 = vector.load %arg6[%c0_18, %c0_19] : memref<128x128xf32, #tpu.memory_space<vmem>>, vector<128x128xf32>
    %cst_20 = arith.constant dense<0.000000e+00> : vector<8x128xf32>
    %18 = tpu.matmul %16, %17, %cst_20 {dimension_numbers = #tpu.dot_dimension_numbers<[1], [0], [0], [1], [0, 0, 1, 1], [], []>} : vector<8x128xf32>, vector<128x128xf32>, vector<8x128xf32> -> vector<8x128xf32>
    %c0_21 = arith.constant 0 : index
    %c0_22 = arith.constant 0 : index
    %19 = vector.load %arg7[%c0_21, %c0_22] : memref<1x128xf32, #tpu.memory_space<vmem>>, vector<1x128xf32>
    %20 = vector.broadcast %19 : vector<1x128xf32> to vector<8x128xf32>
    %21 = arith.addf %18, %20 : vector<8x128xf32>
    %c0_23 = arith.constant 0 : index
    %c0_24 = arith.constant 0 : index
    %22 = vector.load %arg8[%c0_23, %c0_24] : memref<8x128xf32, #tpu.memory_space<vmem>>, vector<8x128xf32>
    tpu.vector_store %arg8[%c0_23, %c0_24], %21 {strides = array<i32>} : memref<8x128xf32, #tpu.memory_space<vmem>>, vector<8x128xf32>,
    return
  }
  func.func @transform_0(%arg0: i32) -> (i32, i32) {
    %c0_i32 = arith.constant 0 : i32
    %c0_i32_0 = arith.constant 0 : i32
    return %arg0, %c0_i32 : i32, i32
  }
  func.func @transform_1(%arg0: i32) -> (i32, i32) {
    %c0_i32 = arith.constant 0 : i32
    %c0_i32_0 = arith.constant 0 : i32
    %c0_i32_1 = arith.constant 0 : i32
    return %c0_i32, %c0_i32_0 : i32, i32
  }
  func.func @transform_2(%arg0: i32) -> (i32, i32) {
    %c0_i32 = arith.constant 0 : i32
    %c0_i32_0 = arith.constant 0 : i32
    %c0_i32_1 = arith.constant 0 : i32
    return %c0_i32, %c0_i32_0 : i32, i32
  }
  func.func @transform_3(%arg0: i32) -> (i32, i32) {
    %c0_i32 = arith.constant 0 : i32
    %c0_i32_0 = arith.constant 0 : i32
    %c0_i32_1 = arith.constant 0 : i32
    return %c0_i32, %c0_i32_0 : i32, i32
  }
  func.func @transform_4(%arg0: i32) -> (i32, i32) {
    %c0_i32 = arith.constant 0 : i32
    %c0_i32_0 = arith.constant 0 : i32
    %c0_i32_1 = arith.constant 0 : i32
    return %c0_i32, %c0_i32_0 : i32, i32
  }
  func.func @transform_5(%arg0: i32) -> (i32, i32) {
    %c0_i32 = arith.constant 0 : i32
    %c0_i32_0 = arith.constant 0 : i32
    %c0_i32_1 = arith.constant 0 : i32
    return %c0_i32, %c0_i32_0 : i32, i32
  }
  func.func @transform_6(%arg0: i32) -> (i32, i32) {
    %c0_i32 = arith.constant 0 : i32
    %c0_i32_0 = arith.constant 0 : i32
    %c0_i32_1 = arith.constant 0 : i32
    return %c0_i32, %c0_i32_0 : i32, i32
  }
  func.func @transform_7(%arg0: i32) -> (i32, i32) {
    %c0_i32 = arith.constant 0 : i32
    %c0_i32_0 = arith.constant 0 : i32
    return %arg0, %c0_i32 : i32, i32
  }
}

</mosaic_0001>

<bundles_post_ra>
// kernel: tpu_custom_call.1
= control target key start
LH: loop header
LB: loop body
LE: loop exit
PB: predicated region body
PF: predicated region fallthrough
CT: control target
= control target key end

     0   :  { %12 = vsyncpa [#allocation5], 0  ;;  %s448_s0 = inlined_call_operand.hbm [shape: f32[8,128], index: 0, kind: input, shape index: {}]   ;;  %s449_s1 = inlined_call_operand.hbm [shape: f32[128,128], index: 1, kind: input, shape index: {}]   ;;  %s450_s2 = inlined_call_operand.vmem [shape: f32[1,128], index: 2, kind: input, shape index: {}]   ;;  %s451_s3 = inlined_call_operand.hbm [shape: f32[128,128], index: 3, kind: input, shape index: {}]   ;;  %s452_s4 = inlined_call_operand.vmem [shape: f32[1,128], index: 4, kind: input, shape index: {}]   ;;  %s453_s5 = inlined_call_operand.hbm [shape: f32[128,128], index: 5, kind: input, shape index: {}]   ;;  %s454_s6 = inlined_call_operand.vmem [shape: f32[1,128], index: 6, kind: input, shape index: {}]   ;;  %s455_s7 = inlined_call_operand.hbm [shape: f32[8,128], index: 7, kind: output, shape index: {}]  }
   0x1   :  { %13 = vsyncpa [#allocation8], 0 }
   0x2   :  { %14 = vsyncpa [#allocation11], 0  ;;  %s31_s26 = sshll.u32 %s449_s1, 4  ;;  %s32_s26 = int_to_ptr.hbm [resolvable:$true] %s31_s26 }
   0x3   :  { %15 = vsyncpa [#allocation6], 0  ;;  %s377_s27 = smov [#allocation7]   ;;  %s21_s8 = sshll.u32 %s448_s0, 4  ;;  %s22_s8 = int_to_ptr.hbm [resolvable:$true] %s21_s8 }
   0x4   :  { %s33_s28 = sshll.u32 %s377_s27, 4  ;;  %s378_s9 = smov 128   ;;  %s34_s28 = int_to_ptr.vmem [resolvable:$true] %s33_s28 }
   0x5   :  { %s379_s10 = smov 8   ;;  %s380_s11 = smov [#allocation4]  }
   0x6   :  { %39 = dma.hbm_to_vmem [thread:$0]  %s32_s26, 2048, %s34_s28, [#allocation8], %s378_s9, %s378_s9, %s379_s10  }
   0x7   :  { %s23_s12 = sshll.u32 %s380_s11, 4  ;;  %s46_s15 = sshll.u32 %s451_s3, 4  ;;  %s24_s12 = int_to_ptr.vmem [resolvable:$true] %s23_s12  ;;  %s47_s15 = int_to_ptr.hbm [resolvable:$true] %s46_s15 }
   0x8   :  { %26 = dma.hbm_to_vmem [thread:$0]  %s22_s8, 128, %s24_s12, [#allocation5]  }
   0x9   :  { %s61_s17 = sshll.u32 %s453_s5, 4  ;;  %s381_s18 = smov [#allocation9]   ;;  %s62_s17 = int_to_ptr.hbm [resolvable:$true] %s61_s17 }
   0xa   :  { %s48_s19 = sshll.u32 %s381_s18, 4  ;;  %s382_s0 = smov [#allocation10]   ;;  %s49_s19 = int_to_ptr.vmem [resolvable:$true] %s48_s19 }
   0xb   :  { %54 = dma.hbm_to_vmem [thread:$0]  %s47_s15, 2048, %s49_s19, [#allocation8], %s378_s9, %s378_s9, %s379_s10  }
   0xc   :  { %s63_s20 = sshll.u32 %s382_s0, 4  ;;  %s64_s20 = int_to_ptr.vmem [resolvable:$true] %s63_s20 }
   0xd   :  { %69 = dma.hbm_to_vmem [thread:$0]  %s62_s17, 2048, %s64_s20, [#allocation11], %s378_s9, %s378_s9, %s379_s10  }
   0xe   :  { %369 = dma.done.wait [#allocation5], 128  }
   0xf   :  { %370 = vsyncadd [#allocation5], 4294967168 }
  0x10   :  { %371 = dma.done.wait [#allocation8], 4096  }
  0x11   :  { %372 = vsyncadd [#allocation8], 4294963200 }
  0x12   :  { %373 = dma.done.wait [#allocation11], 2048  }
  0x13   :  { %374 = vsyncadd [#allocation11], 4294965248  ;;  %v104_v0 = vld [vmem:[#allocation7 + $0x78] sm:$0xff]  ;;  %v103_v1 = vld [vmem:[#allocation7 + $0x70] sm:$0xff]  ;;  %s383_s24 = smov [#allocation12]   ;;  %s223_s28 = sshll.u32 %s455_s7, 4  ;;  %s224_s28 = int_to_ptr.hbm [resolvable:$true] %s223_s28 }
  0x14   :  { %109 = vmatpush.msra.mxu0 %v104_v0  ;;  %v102_v2 = vld [vmem:[#allocation7 + $0x68] sm:$0xff]  ;;  %v101_v3 = vld [vmem:[#allocation7 + $0x60] sm:$0xff]  ;;  %v147_v4 = vld [vmem:[#allocation9 + $0x78] sm:$0xff]  ;;  %s221_s25 = sshll.u32 %s383_s24, 4  ;;  %s222_s25 = int_to_ptr.vmem [resolvable:$true] %s221_s25 }
  0x15   :  { %v100_v5 = vld [vmem:[#allocation7 + $0x58] sm:$0xff]  ;;  %152 = vmatpush.msra.mxu1 %v147_v4  ;;  %v146_v6 = vld [vmem:[#allocation9 + $0x70] sm:$0xff]  ;;  %v145_v7 = vld [vmem:[#allocation9 + $0x68] sm:$0xff] }
  0x16   :  { %110 = vmatpush.msra.mxu0 %v103_v1  ;;  %v99_v8 = vld [vmem:[#allocation7 + $0x50] sm:$0xff]  ;;  %v144_v9 = vld [vmem:[#allocation9 + $0x60] sm:$0xff]  ;;  %v98_v10 = vld [vmem:[#allocation7 + $0x48] sm:$0xff] }
  0x17   :  { %153 = vmatpush.msra.mxu1 %v146_v6  ;;  %v143_v11 = vld [vmem:[#allocation9 + $0x58] sm:$0xff]  ;;  %v97_v12 = vld [vmem:[#allocation7 + $0x40] sm:$0xff]  ;;  %v142_v13 = vld [vmem:[#allocation9 + $0x50] sm:$0xff] }
  0x18   :  { %111 = vmatpush.msra.mxu0 %v102_v2  ;;  %v96_v14 = vld [vmem:[#allocation7 + $0x38] sm:$0xff]  ;;  %v141_v15 = vld [vmem:[#allocation9 + $0x48] sm:$0xff]  ;;  %v95_v16 = vld [vmem:[#allocation7 + $0x30] sm:$0xff] }
  0x19   :  { %154 = vmatpush.msra.mxu1 %v145_v7  ;;  %v140_v17 = vld [vmem:[#allocation9 + $0x40] sm:$0xff]  ;;  %v94_v18 = vld [vmem:[#allocation7 + $0x28] sm:$0xff]  ;;  %v139_v19 = vld [vmem:[#allocation9 + $0x38] sm:$0xff] }
  0x1a   :  { %112 = vmatpush.msra.mxu0 %v101_v3  ;;  %v93_v20 = vld [vmem:[#allocation7 + $0x20] sm:$0xff]  ;;  %v138_v21 = vld [vmem:[#allocation9 + $0x30] sm:$0xff]  ;;  %v92_v22 = vld [vmem:[#allocation7 + $0x18] sm:$0xff] }
  0x1b   :  { %155 = vmatpush.msra.mxu1 %v144_v9  ;;  %v137_v23 = vld [vmem:[#allocation9 + $0x28] sm:$0xff]  ;;  %v91_v24 = vld [vmem:[#allocation7 + $0x10] sm:$0xff]  ;;  %v89_v26 = vld [vmem:[#allocation7] sm:$0xff] }
  0x1c   :  { %113 = vmatpush.msra.mxu0 %v100_v5  ;;  %v90_v25 = vld [vmem:[#allocation7 + $0x8] sm:$0xff]  ;;  %v88_v27 = vld [vmem:[#allocation4] sm:$0xff]  ;;  %v136_v28 = vld [vmem:[#allocation9 + $0x20] sm:$0xff] }
  0x1d   :  { %156 = vmatpush.msra.mxu1 %v143_v11  ;;  %v135_v29 = vld [vmem:[#allocation9 + $0x18] sm:$0xff]  ;;  %v134_v30 = vld [vmem:[#allocation9 + $0x10] sm:$0xff]  ;;  %v133_v31 = vld [vmem:[#allocation9 + $0x8] sm:$0xff] }
  0x1e   :  { %114 = vmatpush.msra.mxu0 %v99_v8  ;;  %v132_v32 = vld [vmem:[#allocation9] sm:$0xff]  ;;  %v190_v33 = vld [vmem:[#allocation10 + $0x78] sm:$0xff]  ;;  %v189_v34 = vld [vmem:[#allocation10 + $0x70] sm:$0xff] }
  0x1f   :  { %157 = vmatpush.msra.mxu1 %v142_v13  ;;  %195 = vmatpush.msra.mxu2 %v190_v33  ;;  %v188_v35 = vld [vmem:[#allocation10 + $0x68] sm:$0xff]  ;;  %v187_v36 = vld [vmem:[#allocation10 + $0x60] sm:$0xff]  ;;  %v186_v37 = vld [vmem:[#allocation10 + $0x58] sm:$0xff] }
  0x20   :  { %115 = vmatpush.msra.mxu0 %v98_v10  ;;  %v185_v38 = vld [vmem:[#allocation10 + $0x50] sm:$0xff]  ;;  %v184_v39 = vld [vmem:[#allocation10 + $0x48] sm:$0xff]  ;;  %v183_v40 = vld [vmem:[#allocation10 + $0x40] sm:$0xff] }
  0x21   :  { %158 = vmatpush.msra.mxu1 %v141_v15  ;;  %196 = vmatpush.msra.mxu2 %v189_v34  ;;  %v182_v41 = vld [vmem:[#allocation10 + $0x38] sm:$0xff]  ;;  %v181_v42 = vld [vmem:[#allocation10 + $0x30] sm:$0xff]  ;;  %v180_v43 = vld [vmem:[#allocation10 + $0x28] sm:$0xff] }
  0x22   :  { %116 = vmatpush.msra.mxu0 %v97_v12  ;;  %v242_v44 = vld [vmem:[%s450_s2] ss:$0 sm:$0xff]  ;;  %v179_v48 = vld [vmem:[#allocation10 + $0x20] sm:$0xff]  ;;  %v177_v50 = vld [vmem:[#allocation10 + $0x10] sm:$0xff] }
  0x23   :  { %159 = vmatpush.msra.mxu1 %v140_v17  ;;  %197 = vmatpush.msra.mxu2 %v188_v35  ;;  %v178_v49 = vld [vmem:[#allocation10 + $0x18] sm:$0xff]  ;;  %v176_v51 = vld [vmem:[#allocation10 + $0x8] sm:$0xff]  ;;  %v175_v52 = vld [vmem:[#allocation10] sm:$0xff] }
  0x24   :  { %117 = vmatpush.msra.mxu0 %v96_v14  ;;  %v243_v53 = vld [vmem:[%s452_s4] ss:$0 sm:$0xff] }
  0x25   :  { %160 = vmatpush.msra.mxu1 %v139_v19  ;;  %198 = vmatpush.msra.mxu2 %v187_v36  ;;  %v244_v57 = vld [vmem:[%s454_s6] ss:$0 sm:$0xff] }
  0x26   :  { %118 = vmatpush.msra.mxu0 %v95_v16 }
  0x27   :  { %161 = vmatpush.msra.mxu1 %v138_v21  ;;  %199 = vmatpush.msra.mxu2 %v186_v37 }
  0x28   :  { %119 = vmatpush.msra.mxu0 %v94_v18 }
  0x29   :  { %162 = vmatpush.msra.mxu1 %v137_v23  ;;  %200 = vmatpush.msra.mxu2 %v185_v38 }
  0x2a   :  { %120 = vmatpush.msra.mxu0 %v93_v20 }
  0x2b   :  { %163 = vmatpush.msra.mxu1 %v136_v28  ;;  %201 = vmatpush.msra.mxu2 %v184_v39 }
  0x2c   :  { %121 = vmatpush.msra.mxu0 %v92_v22 }
  0x2d   :  { %164 = vmatpush.msra.mxu1 %v135_v29  ;;  %202 = vmatpush.msra.mxu2 %v183_v40 }
  0x2e   :  { %122 = vmatpush.msra.mxu0 %v91_v24 }
  0x2f   :  { %165 = vmatpush.msra.mxu1 %v134_v30  ;;  %203 = vmatpush.msra.mxu2 %v182_v41 }
  0x30   :  { %123 = vmatpush.msra.mxu0 %v90_v25 }
  0x31   :  { %166 = vmatpush.msra.mxu1 %v133_v31  ;;  %204 = vmatpush.msra.mxu2 %v181_v42 }
  0x32   :  { %124 = vmatpush.msra.mxu0 %v89_v26 }
  0x33   :  { %125 = vmatmul.f32.vlgmr.msra.gmra.mxu0 %v88_v27  ;;  %167 = vmatpush.msra.mxu1 %v132_v32 }
  0x34   :  { %205 = vmatpush.msra.mxu2 %v180_v43 }
  0x36   :  { %206 = vmatpush.msra.mxu2 %v179_v48 }
  0x38   :  { %207 = vmatpush.msra.mxu2 %v178_v49 }
  0x3a   :  { %208 = vmatpush.msra.mxu2 %v177_v50 }
  0x3c   :  { %209 = vmatpush.msra.mxu2 %v176_v51 }
  0x3e   :  { %210 = vmatpush.msra.mxu2 %v175_v52 }
  0xb0   :  { %v126_v45 = vpop.f32.mrf.mxu0 }
  0xb1   :  { %v127_v46 = vadd.f32 %v242_v44, %v126_v45 }
  0xb3   :  { %245 = vtanh.f32 %v127_v46 }
  0xb9   :  { %v246_v47 = vpop.eup %245 }
  0xba   :  { %168 = vmatmul.f32.vlgmr.msra.gmra.mxu1 %v246_v47 }
 0x137   :  { %v169_v54 = vpop.f32.mrf.mxu1 }
 0x138   :  { %v170_v55 = vadd.f32 %v243_v53, %v169_v54 }
 0x13a   :  { %247 = vtanh.f32 %v170_v55 }
 0x140   :  { %v248_v56 = vpop.eup %247 }
 0x141   :  { %211 = vmatmul.f32.vlgmr.msra.gmra.mxu2 %v248_v56 }
 0x1c4   :  { %v212_v58 = vpop.f32.mrf.mxu2 }
 0x1c5   :  { %v213_v59 = vadd.f32 %v244_v57, %v212_v58 }
 0x1c7   :  { %215 = vst [vmem:[#allocation12] sm:$0xff] %v213_v59 }
 0x1c8   :  { %226 = dma.vmem_to_hbm [thread:$0]  %s222_s25, 128, %s224_s28, [#allocation6]  }
 0x1c9   :  { %375 = dma.done.wait [#allocation6], 128  }
 0x1ca   :  { %376 = vsyncadd [#allocation6], 4294967168 }
 0x1cb   :  { %231 = vsyncpa [#allocation5], 1 }
 0x1cc   :  { %232 = vsyncpa [#allocation8], 1 }
 0x1cd   :  { %233 = vsyncpa [#allocation11], 1 }
 0x1ce   :  { %234 = vsyncpa [#allocation6], 1 }

// kernel: tpu_custom_call.1
= control target key start
LH: loop header
LB: loop body
LE: loop exit
PB: predicated region body
PF: predicated region fallthrough
CT: control target
= control target key end

     0   :  { %12 = vsyncpa [#allocation5], 0  ;;  %s448_s0 = inlined_call_operand.hbm [shape: f32[8,128], index: 0, kind: input, shape index: {}]   ;;  %s449_s1 = inlined_call_operand.hbm [shape: f32[128,128], index: 1, kind: input, shape index: {}]   ;;  %s450_s2 = inlined_call_operand.vmem [shape: f32[1,128], index: 2, kind: input, shape index: {}]   ;;  %s451_s3 = inlined_call_operand.hbm [shape: f32[128,128], index: 3, kind: input, shape index: {}]   ;;  %s452_s4 = inlined_call_operand.vmem [shape: f32[1,128], index: 4, kind: input, shape index: {}]   ;;  %s453_s5 = inlined_call_operand.hbm [shape: f32[128,128], index: 5, kind: input, shape index: {}]   ;;  %s454_s6 = inlined_call_operand.vmem [shape: f32[1,128], index: 6, kind: input, shape index: {}]   ;;  %s455_s7 = inlined_call_operand.hbm [shape: f32[8,128], index: 7, kind: output, shape index: {}]  }
   0x1   :  { %13 = vsyncpa [#allocation8], 0 }
   0x2   :  { %14 = vsyncpa [#allocation11], 0  ;;  %s31_s26 = sshll.u32 %s449_s1, 4  ;;  %s32_s26 = int_to_ptr.hbm [resolvable:$true] %s31_s26 }
   0x3   :  { %15 = vsyncpa [#allocation6], 0  ;;  %s377_s27 = smov [#allocation7]   ;;  %s21_s8 = sshll.u32 %s448_s0, 4  ;;  %s22_s8 = int_to_ptr.hbm [resolvable:$true] %s21_s8 }
   0x4   :  { %s33_s28 = sshll.u32 %s377_s27, 4  ;;  %s378_s9 = smov 128   ;;  %s34_s28 = int_to_ptr.vmem [resolvable:$true] %s33_s28 }
   0x5   :  { %s379_s10 = smov 8   ;;  %s380_s11 = smov [#allocation4]  }
   0x6   :  { %39 = dma.hbm_to_vmem [thread:$0]  %s32_s26, 2048, %s34_s28, [#allocation8], %s378_s9, %s378_s9, %s379_s10  }
   0x7   :  { %s23_s12 = sshll.u32 %s380_s11, 4  ;;  %s46_s15 = sshll.u32 %s451_s3, 4  ;;  %s24_s12 = int_to_ptr.vmem [resolvable:$true] %s23_s12  ;;  %s47_s15 = int_to_ptr.hbm [resolvable:$true] %s46_s15 }
   0x8   :  { %26 = dma.hbm_to_vmem [thread:$0]  %s22_s8, 128, %s24_s12, [#allocation5]  }
   0x9   :  { %s61_s17 = sshll.u32 %s453_s5, 4  ;;  %s381_s18 = smov [#allocation9]   ;;  %s62_s17 = int_to_ptr.hbm [resolvable:$true] %s61_s17 }
   0xa   :  { %s48_s19 = sshll.u32 %s381_s18, 4  ;;  %s382_s0 = smov [#allocation10]   ;;  %s49_s19 = int_to_ptr.vmem [resolvable:$true] %s48_s19 }
   0xb   :  { %54 = dma.hbm_to_vmem [thread:$0]  %s47_s15, 2048, %s49_s19, [#allocation8], %s378_s9, %s378_s9, %s379_s10  }
   0xc   :  { %s63_s20 = sshll.u32 %s382_s0, 4  ;;  %s64_s20 = int_to_ptr.vmem [resolvable:$true] %s63_s20 }
   0xd   :  { %69 = dma.hbm_to_vmem [thread:$0]  %s62_s17, 2048, %s64_s20, [#allocation11], %s378_s9, %s378_s9, %s379_s10  }
   0xe   :  { %369 = dma.done.wait [#allocation5], 128  }
   0xf   :  { %370 = vsyncadd [#allocation5], 4294967168 }
  0x10   :  { %371 = dma.done.wait [#allocation8], 4096  }
  0x11   :  { %372 = vsyncadd [#allocation8], 4294963200 }
  0x12   :  { %373 = dma.done.wait [#allocation11], 2048  }
  0x13   :  { %374 = vsyncadd [#allocation11], 4294965248  ;;  %v104_v0 = vld [vmem:[#allocation7 + $0x78] sm:$0xff]  ;;  %v103_v1 = vld [vmem:[#allocation7 + $0x70] sm:$0xff]  ;;  %s383_s24 = smov [#allocation12]   ;;  %s223_s28 = sshll.u32 %s455_s7, 4  ;;  %s224_s28 = int_to_ptr.hbm [resolvable:$true] %s223_s28 }
  0x14   :  { %109 = vmatpush.msra.mxu0 %v104_v0  ;;  %v102_v2 = vld [vmem:[#allocation7 + $0x68] sm:$0xff]  ;;  %v101_v3 = vld [vmem:[#allocation7 + $0x60] sm:$0xff]  ;;  %v147_v4 = vld [vmem:[#allocation9 + $0x78] sm:$0xff]  ;;  %s221_s25 = sshll.u32 %s383_s24, 4  ;;  %s222_s25 = int_to_ptr.vmem [resolvable:$true] %s221_s25 }
  0x15   :  { %v100_v5 = vld [vmem:[#allocation7 + $0x58] sm:$0xff]  ;;  %152 = vmatpush.msra.mxu1 %v147_v4  ;;  %v146_v6 = vld [vmem:[#allocation9 + $0x70] sm:$0xff]  ;;  %v145_v7 = vld [vmem:[#allocation9 + $0x68] sm:$0xff] }
  0x16   :  { %110 = vmatpush.msra.mxu0 %v103_v1  ;;  %v99_v8 = vld [vmem:[#allocation7 + $0x50] sm:$0xff]  ;;  %v144_v9 = vld [vmem:[#allocation9 + $0x60] sm:$0xff]  ;;  %v98_v10 = vld [vmem:[#allocation7 + $0x48] sm:$0xff] }
  0x17   :  { %153 = vmatpush.msra.mxu1 %v146_v6  ;;  %v143_v11 = vld [vmem:[#allocation9 + $0x58] sm:$0xff]  ;;  %v97_v12 = vld [vmem:[#allocation7 + $0x40] sm:$0xff]  ;;  %v142_v13 = vld [vmem:[#allocation9 + $0x50] sm:$0xff] }
  0x18   :  { %111 = vmatpush.msra.mxu0 %v102_v2  ;;  %v96_v14 = vld [vmem:[#allocation7 + $0x38] sm:$0xff]  ;;  %v141_v15 = vld [vmem:[#allocation9 + $0x48] sm:$0xff]  ;;  %v95_v16 = vld [vmem:[#allocation7 + $0x30] sm:$0xff] }
  0x19   :  { %154 = vmatpush.msra.mxu1 %v145_v7  ;;  %v140_v17 = vld [vmem:[#allocation9 + $0x40] sm:$0xff]  ;;  %v94_v18 = vld [vmem:[#allocation7 + $0x28] sm:$0xff]  ;;  %v139_v19 = vld [vmem:[#allocation9 + $0x38] sm:$0xff] }
  0x1a   :  { %112 = vmatpush.msra.mxu0 %v101_v3  ;;  %v93_v20 = vld [vmem:[#allocation7 + $0x20] sm:$0xff]  ;;  %v138_v21 = vld [vmem:[#allocation9 + $0x30] sm:$0xff]  ;;  %v92_v22 = vld [vmem:[#allocation7 + $0x18] sm:$0xff] }
  0x1b   :  { %155 = vmatpush.msra.mxu1 %v144_v9  ;;  %v137_v23 = vld [vmem:[#allocation9 + $0x28] sm:$0xff]  ;;  %v91_v24 = vld [vmem:[#allocation7 + $0x10] sm:$0xff]  ;;  %v89_v26 = vld [vmem:[#allocation7] sm:$0xff] }
  0x1c   :  { %113 = vmatpush.msra.mxu0 %v100_v5  ;;  %v90_v25 = vld [vmem:[#allocation7 + $0x8] sm:$0xff]  ;;  %v88_v27 = vld [vmem:[#allocation4] sm:$0xff]  ;;  %v136_v28 = vld [vmem:[#allocation9 + $0x20] sm:$0xff] }
  0x1d   :  { %156 = vmatpush.msra.mxu1 %v143_v11  ;;  %v135_v29 = vld [vmem:[#allocation9 + $0x18] sm:$0xff]  ;;  %v134_v30 = vld [vmem:[#allocation9 + $0x10] sm:$0xff]  ;;  %v133_v31 = vld [vmem:[#allocation9 + $0x8] sm:$0xff] }
  0x1e   :  { %114 = vmatpush.msra.mxu0 %v99_v8  ;;  %v132_v32 = vld [vmem:[#allocation9] sm:$0xff]  ;;  %v190_v33 = vld [vmem:[#allocation10 + $0x78] sm:$0xff]  ;;  %v189_v34 = vld [vmem:[#allocation10 + $0x70] sm:$0xff] }
  0x1f   :  { %157 = vmatpush.msra.mxu1 %v142_v13  ;;  %195 = vmatpush.msra.mxu2 %v190_v33  ;;  %v188_v35 = vld [vmem:[#allocation10 + $0x68] sm:$0xff]  ;;  %v187_v36 = vld [vmem:[#allocation10 + $0x60] sm:$0xff]  ;;  %v186_v37 = vld [vmem:[#allocation10 + $0x58] sm:$0xff] }
  0x20   :  { %115 = vmatpush.msra.mxu0 %v98_v10  ;;  %v185_v38 = vld [vmem:[#allocation10 + $0x50] sm:$0xff]  ;;  %v184_v39 = vld [vmem:[#allocation10 + $0x48] sm:$0xff]  ;;  %v183_v40 = vld [vmem:[#allocation10 + $0x40] sm:$0xff] }
  0x21   :  { %158 = vmatpush.msra.mxu1 %v141_v15  ;;  %196 = vmatpush.msra.mxu2 %v189_v34  ;;  %v182_v41 = vld [vmem:[#allocation10 + $0x38] sm:$0xff]  ;;  %v181_v42 = vld [vmem:[#allocation10 + $0x30] sm:$0xff]  ;;  %v180_v43 = vld [vmem:[#allocation10 + $0x28] sm:$0xff] }
  0x22   :  { %116 = vmatpush.msra.mxu0 %v97_v12  ;;  %v242_v44 = vld [vmem:[%s450_s2] ss:$0 sm:$0xff]  ;;  %v179_v48 = vld [vmem:[#allocation10 + $0x20] sm:$0xff]  ;;  %v177_v50 = vld [vmem:[#allocation10 + $0x10] sm:$0xff] }
  0x23   :  { %159 = vmatpush.msra.mxu1 %v140_v17  ;;  %197 = vmatpush.msra.mxu2 %v188_v35  ;;  %v178_v49 = vld [vmem:[#allocation10 + $0x18] sm:$0xff]  ;;  %v176_v51 = vld [vmem:[#allocation10 + $0x8] sm:$0xff]  ;;  %v175_v52 = vld [vmem:[#allocation10] sm:$0xff] }
  0x24   :  { %117 = vmatpush.msra.mxu0 %v96_v14  ;;  %v243_v53 = vld [vmem:[%s452_s4] ss:$0 sm:$0xff] }
  0x25   :  { %160 = vmatpush.msra.mxu1 %v139_v19  ;;  %198 = vmatpush.msra.mxu2 %v187_v36  ;;  %v244_v57 = vld [vmem:[%s454_s6] ss:$0 sm:$0xff] }
  0x26   :  { %118 = vmatpush.msra.mxu0 %v95_v16 }
  0x27   :  { %161 = vmatpush.msra.mxu1 %v138_v21  ;;  %199 = vmatpush.msra.mxu2 %v186_v37 }
  0x28   :  { %119 = vmatpush.msra.mxu0 %v94_v18 }
  0x29   :  { %162 = vmatpush.msra.mxu1 %v137_v23  ;;  %200 = vmatpush.msra.mxu2 %v185_v38 }
  0x2a   :  { %120 = vmatpush.msra.mxu0 %v93_v20 }
  0x2b   :  { %163 = vmatpush.msra.mxu1 %v136_v28  ;;  %201 = vmatpush.msra.mxu2 %v184_v39 }
  0x2c   :  { %121 = vmatpush.msra.mxu0 %v92_v22 }
  0x2d   :  { %164 = vmatpush.msra.mxu1 %v135_v29  ;;  %202 = vmatpush.msra.mxu2 %v183_v40 }
  0x2e   :  { %122 = vmatpush.msra.mxu0 %v91_v24 }
  0x2f   :  { %165 = vmatpush.msra.mxu1 %v134_v30  ;;  %203 = vmatpush.msra.mxu2 %v182_v41 }
  0x30   :  { %123 = vmatpush.msra.mxu0 %v90_v25 }
  0x31   :  { %166 = vmatpush.msra.mxu1 %v133_v31  ;;  %204 = vmatpush.msra.mxu2 %v181_v42 }
  0x32   :  { %124 = vmatpush.msra.mxu0 %v89_v26 }
  0x33   :  { %125 = vmatmul.f32.vlgmr.msra.gmra.mxu0 %v88_v27  ;;  %167 = vmatpush.msra.mxu1 %v132_v32 }
  0x34   :  { %205 = vmatpush.msra.mxu2 %v180_v43 }
  0x36   :  { %206 = vmatpush.msra.mxu2 %v179_v48 }
  0x38   :  { %207 = vmatpush.msra.mxu2 %v178_v49 }
  0x3a   :  { %208 = vmatpush.msra.mxu2 %v177_v50 }
  0x3c   :  { %209 = vmatpush.msra.mxu2 %v176_v51 }
  0x3e   :  { %210 = vmatpush.msra.mxu2 %v175_v52 }
  0xb0   :  { %v126_v45 = vpop.f32.mrf.mxu0 }
  0xb1   :  { %v127_v46 = vadd.f32 %v242_v44, %v126_v45 }
  0xb3   :  { %245 = vtanh.f32 %v127_v46 }
  0xb9   :  { %v246_v47 = vpop.eup %245 }
  0xba   :  { %168 = vmatmul.f32.vlgmr.msra.gmra.mxu1 %v246_v47 }
 0x137   :  { %v169_v54 = vpop.f32.mrf.mxu1 }
 0x138   :  { %v170_v55 = vadd.f32 %v243_v53, %v169_v54 }
 0x13a   :  { %247 = vtanh.f32 %v170_v55 }
 0x140   :  { %v248_v56 = vpop.eup %247 }
 0x141   :  { %211 = vmatmul.f32.vlgmr.msra.gmra.mxu2 %v248_v56 }
 0x1c4   :  { %v212_v58 = vpop.f32.mrf.mxu2 }
 0x1c5   :  { %v213_v59 = vadd.f32 %v244_v57, %v212_v58 }
 0x1c7   :  { %215 = vst [vmem:[#allocation12] sm:$0xff] %v213_v59 }
 0x1c8   :  { %226 = dma.vmem_to_hbm [thread:$0]  %s222_s25, 128, %s224_s28, [#allocation6]  }
 0x1c9   :  { %375 = dma.done.wait [#allocation6], 128  }
 0x1ca   :  { %376 = vsyncadd [#allocation6], 4294967168 }
 0x1cb   :  { %231 = vsyncpa [#allocation5], 1 }
 0x1cc   :  { %232 = vsyncpa [#allocation8], 1 }
 0x1cd   :  { %233 = vsyncpa [#allocation11], 1 }
 0x1ce   :  { %234 = vsyncpa [#allocation6], 1 }

</bundles_post_ra>
